<compile_context>
chip_gen: v7x
topology: tpu7x:2x2x1
jax: 0.10.0
libtpu: 0.0.40
codegen_flags: <defaults>
</compile_context>

<pallas_src>
import functools
import math

import jax
import jax.numpy as jnp
from jax.experimental import pallas as pl
from jax.experimental.pallas import tpu as pltpu


def _round_up(n, m):
    return ((n + m - 1) // m) * m


# ---------------------------------------------------------------------------
# Kernels
# ---------------------------------------------------------------------------

def _ffn_resident_kernel(x_ref, w0_ref, b0_ref, w1_ref, b1_ref, w2_ref, b2_ref,
                         o_ref, *, compute_dtype):
    """One batch tile; W0, W1 fully VMEM-resident (single-buffered)."""
    x = x_ref[...].astype(compute_dtype)                        # f32 HBM -> cast in-kernel

    h0 = jnp.dot(x, w0_ref[...], preferred_element_type=jnp.float32)
    a0 = jnp.maximum(h0 + b0_ref[...], 0.0).astype(compute_dtype)   # next matmul's LHS

    h1 = jnp.dot(a0, w1_ref[...], preferred_element_type=jnp.float32)
    a1 = jnp.maximum(h1 + b1_ref[...], 0.0)                     # f32 epilogue (v5e-safe)

    # Readout: (width,1) RHS would waste the MXU; VPU multiply + lane reduction
    # against W2^T (1, width) f32 instead.
    y = jnp.sum(a1 * w2_ref[...], axis=-1, keepdims=True) + b2_ref[0]
    o_ref[...] = y.astype(o_ref.dtype)


def _ffn_split_kernel(x_ref, w0_ref, b0_ref, w1_ref, b1_ref, w2_ref, b2_ref,
                      o_ref, a0_ref, acc_ref, *, compute_dtype):
    """Large-width path: stream (width, tn) column blocks of W1 over the last
    ('arbitrary') grid axis; W0 and a0 stay resident; accumulate the (tile_m, 1)
    readout in f32 scratch with init/finalize."""
    j = pl.program_id(1)

    @pl.when(j == 0)
    def _():
        x = x_ref[...].astype(compute_dtype)
        h0 = jnp.dot(x, w0_ref[...], preferred_element_type=jnp.float32)
        a0_ref[...] = jnp.maximum(h0 + b0_ref[...], 0.0).astype(compute_dtype)
        acc_ref[...] = jnp.zeros_like(acc_ref)

    h1 = jnp.dot(a0_ref[...], w1_ref[...], preferred_element_type=jnp.float32)
    a1 = jnp.maximum(h1 + b1_ref[...], 0.0)
    acc_ref[...] += jnp.sum(a1 * w2_ref[...], axis=-1, keepdims=True)

    @pl.when(j == pl.num_programs(1) - 1)
    def _():
        o_ref[...] = (acc_ref[...] + b2_ref[0]).astype(o_ref.dtype)


# ---------------------------------------------------------------------------
# Parameter preparation (amortize over many forward calls)
# ---------------------------------------------------------------------------

def prepare_params(weights, biases, *, beta=0.1, compute_dtype=jnp.bfloat16):
    """Fold 1/sqrt(fan_in) into weights, beta into biases, zero-pad width to a
    multiple of 128 (exact), cast matmul weights to compute_dtype."""
    w0, w1, w2 = weights
    b0, b1, b2 = biases
    input_size, width = w0.shape
    assert w1.shape == (width, width) and w2.shape == (width, 1)

    width_p = _round_up(width, 128)
    pad = width_p - width

    inv0 = 1.0 / math.sqrt(input_size)   # 1/sqrt(ws[0])
    inv1 = 1.0 / math.sqrt(width)        # 1/sqrt(ws[1])
    inv2 = 1.0 / math.sqrt(width)        # 1/sqrt(ws[-2])

    w0p = jnp.pad(inv0 * w0, ((0, 0), (0, pad))).astype(compute_dtype)     # (in, Wp)
    w1p = jnp.pad(inv1 * w1, ((0, pad), (0, pad))).astype(compute_dtype)   # (Wp, Wp)
    w2p = jnp.pad((inv2 * w2).reshape(1, width),
                  ((0, 0), (0, pad))).astype(jnp.float32)                  # (1, Wp) f32
    b0p = jnp.pad((beta * b0).reshape(1, width),
                  ((0, 0), (0, pad))).astype(jnp.float32)
    b1p = jnp.pad((beta * b1).reshape(1, width),
                  ((0, 0), (0, pad))).astype(jnp.float32)
    b2p = (beta * b2).reshape(1).astype(jnp.float32)                       # SMEM scalar
    return (w0p, b0p, w1p, b1p, w2p, b2p)


# ---------------------------------------------------------------------------
# VMEM budgeting / path planning
# ---------------------------------------------------------------------------

def _vmem_budget_bytes():
    """Generation-aware budget: ~7/8 of physical VMEM (112 MiB on 128-MiB v5e/v6e,
    56 MiB on 64-MiB v7x); conservative 56 MiB fallback if the query fails."""
    cap = 64 << 20
    try:
        info = pltpu.get_tpu_info()
        cap = int(getattr(info, "vmem_capacity_bytes", cap))
    except Exception:
        pass
    return (cap // 8) * 7


def _resident_need(tm, input_size, width, cbytes):
    weights = (input_size * width + width * width) * cbytes + 3 * width * 4   # x1 buffers
    tiles = 2 * tm * (input_size * 4 + 4)          # double-buffered f32 x / f32 out tiles
    temps = tm * input_size * cbytes + tm * width * (12 + cbytes)   # x-cast, h0/a0/h1/a1
    return weights + tiles + temps + (1 << 20)


def _split_need(tm, tn, input_size, width, cbytes):
    resident = input_size * width * cbytes + width * 4              # W0, b0 (x1 buffers)
    streamed = 2 * (width * tn * cbytes + 2 * tn * 4)               # W1/b1/w2 col blocks, x2
    tiles = 2 * tm * (input_size * 4 + 4)
    scratch = tm * width * cbytes + tm * 4                          # a0, readout acc
    temps = tm * input_size * cbytes + tm * width * 4 + 2 * tm * tn * 4
    return resident + streamed + tiles + scratch + temps + (1 << 20)


def _plan(batch, input_size, width_p, cbytes, budget, tile_m_hint=None, force_path=None):
    """Pick (path, tile_m, tn) that fits the VMEM budget; error out if nothing fits."""
    cap = 1024 if tile_m_hint is None else max(8, _round_up(int(tile_m_hint), 8))
    if batch > 512:
        # keep >=2 grid steps so both TensorCores of a 2-TC chip (v7x) get work
        cap = min(cap, max(256, _round_up(pl.cdiv(batch, 2), 256)))
    cap = max(8, min(cap, _round_up(batch, 8)))

    def shrink(t):
        return max(8, _round_up(t // 2, 8))

    if force_path != "split":
        floor = 8 if force_path == "resident" else 128
        tm = cap
        while True:
            if _resident_need(tm, input_size, width_p, cbytes) <= budget:
                return "resident", tm, None
            if tm <= floor:
                break
            tm = shrink(tm)
        if force_path == "resident":
            raise ValueError(
                f"FeedforwardNetwork resident path does not fit the VMEM budget "
                f"({budget} bytes) for width={width_p}, input_size={input_size}.")

    tm = cap
    while True:
        for tn in (512, 256, 128):
            if width_p % tn == 0 and _split_need(tm, tn, input_size, width_p, cbytes) <= budget:
                return "split", tm, tn
        if tm <= 8:
            raise ValueError(
                f"FeedforwardNetwork kernel does not fit the VMEM budget "
                f"({budget} bytes) even with the W1-split path (width={width_p}).")
        tm = shrink(tm)


# ---------------------------------------------------------------------------
# Forward wrappers
# ---------------------------------------------------------------------------

def feedforward_network_forward_prepared(x, prepared, *, compute_dtype=jnp.bfloat16,
                                         tile_m=None, force_path=None):
    w0p, b0p, w1p, b1p, w2p, b2p = prepared
    batch, input_size = x.shape
    assert w0p.shape[0] == input_size
    width_p = w0p.shape[1]

    if x.dtype not in (jnp.dtype(jnp.float32), jnp.dtype(compute_dtype)):
        x = x.astype(jnp.float32)   # normally a no-op; cast to compute_dtype happens in-kernel

    cbytes = jnp.dtype(compute_dtype).itemsize
    budget = _vmem_budget_bytes()
    path, tm, tn = _plan(batch, input_size, width_p, cbytes, budget,
                         tile_m_hint=tile_m, force_path=force_path)

    grid_m = pl.cdiv(batch, tm)          # ragged last block; tail rows masked on store
    out_shape = jax.ShapeDtypeStruct((batch, 1), jnp.float32)
    resident = pl.Buffered(1)            # constant-index blocks: single buffer, DMA'd once

    if path == "resident":
        kernel = functools.partial(_ffn_resident_kernel, compute_dtype=compute_dtype)
        out = pl.pallas_call(
            kernel,
            out_shape=out_shape,
            grid=(grid_m,),
            in_specs=[
                pl.BlockSpec((tm, input_size), lambda i: (i, 0)),                  # x (pipelined)
                pl.BlockSpec((input_size, width_p), lambda i: (0, 0), pipeline_mode=resident),
                pl.BlockSpec((1, width_p), lambda i: (0, 0), pipeline_mode=resident),
                pl.BlockSpec((width_p, width_p), lambda i: (0, 0), pipeline_mode=resident),
                pl.BlockSpec((1, width_p), lambda i: (0, 0), pipeline_mode=resident),
                pl.BlockSpec((1, width_p), lambda i: (0, 0), pipeline_mode=resident),
                pl.BlockSpec(memory_space=pltpu.SMEM),                             # beta*b2
            ],
            out_specs=pl.BlockSpec((tm, 1), lambda i: (i, 0)),
            compiler_params=pltpu.CompilerParams(
                dimension_semantics=("parallel",),
                vmem_limit_bytes=budget),
        )(x, w0p, b0p, w1p, b1p, w2p, b2p)
    else:  # "split": stream W1 column blocks over the last, arbitrary grid axis
        kernel = functools.partial(_ffn_split_kernel, compute_dtype=compute_dtype)
        ncol = width_p // tn
        out = pl.pallas_call(
            kernel,
            out_shape=out_shape,
            grid=(grid_m, ncol),
            in_specs=[
                pl.BlockSpec((tm, input_size), lambda i, j: (i, 0)),               # x
                pl.BlockSpec((input_size, width_p), lambda i, j: (0, 0), pipeline_mode=resident),
                pl.BlockSpec((1, width_p), lambda i, j: (0, 0), pipeline_mode=resident),
                pl.BlockSpec((width_p, tn), lambda i, j: (0, j)),                  # W1 cols (streamed)
                pl.BlockSpec((1, tn), lambda i, j: (0, j)),                        # b1 slice
                pl.BlockSpec((1, tn), lambda i, j: (0, j)),                        # W2^T slice
                pl.BlockSpec(memory_space=pltpu.SMEM),                             # beta*b2
            ],
            out_specs=pl.BlockSpec((tm, 1), lambda i, j: (i, 0)),
            scratch_shapes=[pltpu.VMEM((tm, width_p), compute_dtype),              # a0 (resident)
                            pltpu.VMEM((tm, 1), jnp.float32)],                     # readout acc
            compiler_params=pltpu.CompilerParams(
                dimension_semantics=("parallel", "arbitrary"),
                vmem_limit_bytes=budget),
        )(x, w0p, b0p, w1p, b1p, w2p, b2p)

    return out.reshape(-1)   # pred.flatten()


def feedforward_network_forward(x, weights, biases, *, beta=0.1,
                                compute_dtype=jnp.bfloat16, tile_m=None, force_path=None):
    prepared = prepare_params(weights, biases, beta=beta, compute_dtype=compute_dtype)
    return feedforward_network_forward_prepared(
        x, prepared, compute_dtype=compute_dtype, tile_m=tile_m, force_path=force_path)


# ---------------------------------------------------------------------------
# References / tests
# ---------------------------------------------------------------------------

def make_params(key, input_size, width, depth=2):
    """Deterministic standard-normal init matching torch.randn shapes."""
    ws = [input_size] + [width] * depth + [1]
    weights, biases = [], []
    for i in range(depth + 1):
        key, kw, kb = jax.random.split(key, 3)
        weights.append(jax.random.normal(kw, (ws[i], ws[i + 1]), jnp.float32))
        biases.append(jax.random.normal(kb, (ws[i + 1],), jnp.float32))
    return weights, biases


def reference_forward(x, weights, biases, *, beta=0.1):
    """Pure-JAX f32 reference mirroring the PyTorch module."""
    ws_in = [w.shape[0] for w in weights]
    activ = x
    for i in range(len(weights) - 1):
        pre = (1.0 / math.sqrt(ws_in[i])) * activ @ weights[i] + beta * biases[i]
        activ = jnp.maximum(pre, 0.0)
    pred = (1.0 / math.sqrt(ws_in[-1])) * activ @ weights[-1] + beta * biases[-1]
    return pred.reshape(-1)


def _emulated_forward(x, prepared, *, compute_dtype):
    """Plain-jnp mirror of the kernel's exact casting (tight check for bf16 mode)."""
    w0p, b0p, w1p, b1p, w2p, b2p = prepared
    h0 = jnp.dot(x.astype(compute_dtype), w0p, preferred_element_type=jnp.float32) + b0p
    a0 = jnp.maximum(h0, 0.0).astype(compute_dtype)
    h1 = jnp.dot(a0, w1p, preferred_element_type=jnp.float32) + b1p
    a1 = jnp.maximum(h1, 0.0)
    return (jnp.sum(a1 * w2p, axis=-1) + b2p[0]).reshape(-1)


if __name__ == "__main__":
    beta = 0.1

    # --- resident path (auto-selected at small width) --------------------------------
    batch, input_size, width = 8, 16, 64
    key = jax.random.PRNGKey(0)
    key, kx = jax.random.split(key)
    x = jax.random.normal(kx, (batch, input_size), jnp.float32)
    weights, biases = make_params(key, input_size, width, depth=2)
    ref = reference_forward(x, weights, biases, beta=beta)

    # 1) exact f32 compute
    out_f32 = feedforward_network_forward(x, weights, biases, beta=beta,
                                          compute_dtype=jnp.float32)
    out_f32 = jax.block_until_ready(out_f32)
    assert out_f32.shape == (batch,)
    assert jnp.allclose(out_f32, ref, atol=1e-4, rtol=1e-3), (out_f32, ref)

    # 2) bf16 matmul inputs with f32 MXU accumulation (performance path)
    prepared_bf16 = prepare_params(weights, biases, beta=beta, compute_dtype=jnp.bfloat16)
    out_bf16 = feedforward_network_forward_prepared(x, prepared_bf16,
                                                    compute_dtype=jnp.bfloat16)
    out_bf16 = jax.block_until_ready(out_bf16)
    emu = _emulated_forward(x, prepared_bf16, compute_dtype=jnp.bfloat16)
    assert out_bf16.shape == (batch,)
    assert jnp.allclose(out_bf16, emu, atol=2e-3, rtol=2e-3), (out_bf16, emu)
    assert jnp.allclose(out_bf16, ref, atol=1e-1, rtol=1e-1), (out_bf16, ref)

    # --- W1-column-split path (forced here at small width; auto when W1 overflows VMEM)
    batch2, in2, width2 = 16, 8, 512
    key2 = jax.random.PRNGKey(0)
    key2, kx2 = jax.random.split(key2)
    x2 = jax.random.normal(kx2, (batch2, in2), jnp.float32)
    w_s, b_s = make_params(key2, in2, width2, depth=2)
    ref2 = reference_forward(x2, w_s, b_s, beta=beta)

    out_split_f32 = feedforward_network_forward(x2, w_s, b_s, beta=beta,
                                                compute_dtype=jnp.float32,
                                                force_path="split")
    out_split_f32 = jax.block_until_ready(out_split_f32)
    assert out_split_f32.shape == (batch2,)
    assert jnp.allclose(out_split_f32, ref2, atol=1e-3, rtol=1e-3), (out_split_f32, ref2)

    prepared2 = prepare_params(w_s, b_s, beta=beta, compute_dtype=jnp.bfloat16)
    out_split_bf16 = feedforward_network_forward_prepared(x2, prepared2,
                                                          compute_dtype=jnp.bfloat16,
                                                          force_path="split")
    out_split_bf16 = jax.block_until_ready(out_split_bf16)
    emu2 = _emulated_forward(x2, prepared2, compute_dtype=jnp.bfloat16)
    assert jnp.allclose(out_split_bf16, emu2, atol=5e-3, rtol=5e-3), (out_split_bf16, emu2)
    assert jnp.allclose(out_split_bf16, ref2, atol=1e-1, rtol=1e-1), (out_split_bf16, ref2)

    print("KERNEL_OK")
</pallas_src>

<mosaic_0001>
module attributes {stable_mosaic.version = 11 : i64} {
  func.func @_ffn_resident_kernel(%arg0: i32, %arg1: memref<8x16xf32, #tpu.memory_space<vmem>>, %arg2: memref<16x128xf32, #tpu.memory_space<vmem>>, %arg3: memref<1x128xf32, #tpu.memory_space<vmem>>, %arg4: memref<128x128xf32, #tpu.memory_space<vmem>>, %arg5: memref<1x128xf32, #tpu.memory_space<vmem>>, %arg6: memref<1x128xf32, #tpu.memory_space<vmem>>, %arg7: memref<1xf32, #tpu.memory_space<smem>>, %arg8: memref<8x1xf32, #tpu.memory_space<vmem>>) attributes {dimension_semantics = [#tpu.dimension_semantics<parallel>], iteration_bounds = array<i64: 1>, scalar_prefetch = 0 : i64, scratch_operands = 0 : i64, tpu.core_type = #tpu.core_type<tc>, window_params = [{transform_indices = @transform_0, window_bounds = array<i64: 8, 16>}, {pipeline_mode = #tpu.pipeline_mode<synchronous>, transform_indices = @transform_1, window_bounds = array<i64: 16, 128>}, {pipeline_mode = #tpu.pipeline_mode<synchronous>, transform_indices = @transform_2, window_bounds = array<i64: 1, 128>}, {pipeline_mode = #tpu.pipeline_mode<synchronous>, transform_indices = @transform_3, window_bounds = array<i64: 128, 128>}, {pipeline_mode = #tpu.pipeline_mode<synchronous>, transform_indices = @transform_4, window_bounds = array<i64: 1, 128>}, {pipeline_mode = #tpu.pipeline_mode<synchronous>, transform_indices = @transform_5, window_bounds = array<i64: 1, 128>}, {transform_indices = @transform_6, window_bounds = array<i64: 1>}, {transform_indices = @transform_7, window_bounds = array<i64: 8, 1>}]} {
    %c0 = arith.constant 0 : index
    %c0_0 = arith.constant 0 : index
    %0 = vector.load %arg1[%c0, %c0_0] : memref<8x16xf32, #tpu.memory_space<vmem>>, vector<8x16xf32>
    %c0_1 = arith.constant 0 : index
    %c0_2 = arith.constant 0 : index
    %1 = vector.load %arg2[%c0_1, %c0_2] : memref<16x128xf32, #tpu.memory_space<vmem>>, vector<16x128xf32>
    %cst = arith.constant dense<0.000000e+00> : vector<8x128xf32>
    %2 = tpu.matmul %0, %1, %cst {dimension_numbers = #tpu.dot_dimension_numbers<[1], [0], [0], [1], [0, 0, 1, 1], [], []>} : vector<8x16xf32>, vector<16x128xf32>, vector<8x128xf32> -> vector<8x128xf32>
    %c0_3 = arith.constant 0 : index
    %c0_4 = arith.constant 0 : index
    %3 = vector.load %arg3[%c0_3, %c0_4] : memref<1x128xf32, #tpu.memory_space<vmem>>, vector<1x128xf32>
    %4 = vector.broadcast %3 : vector<1x128xf32> to vector<8x128xf32>
    %5 = arith.addf %2, %4 : vector<8x128xf32>
    %cst_5 = arith.constant 0.000000e+00 : f32
    %6 = vector.broadcast %cst_5 : f32 to vector<8x128xf32>
    %7 = arith.maximumf %5, %6 : vector<8x128xf32>
    %c0_6 = arith.constant 0 : index
    %c0_7 = arith.constant 0 : index
    %8 = vector.load %arg4[%c0_6, %c0_7] : memref<128x128xf32, #tpu.memory_space<vmem>>, vector<128x128xf32>
    %cst_8 = arith.constant dense<0.000000e+00> : vector<8x128xf32>
    %9 = tpu.matmul %7, %8, %cst_8 {dimension_numbers = #tpu.dot_dimension_numbers<[1], [0], [0], [1], [0, 0, 1, 1], [], []>} : vector<8x128xf32>, vector<128x128xf32>, vector<8x128xf32> -> vector<8x128xf32>
    %c0_9 = arith.constant 0 : index
    %c0_10 = arith.constant 0 : index
    %10 = vector.load %arg5[%c0_9, %c0_10] : memref<1x128xf32, #tpu.memory_space<vmem>>, vector<1x128xf32>
    %11 = vector.broadcast %10 : vector<1x128xf32> to vector<8x128xf32>
    %12 = arith.addf %9, %11 : vector<8x128xf32>
    %cst_11 = arith.constant 0.000000e+00 : f32
    %13 = vector.broadcast %cst_11 : f32 to vector<8x128xf32>
    %14 = arith.maximumf %12, %13 : vector<8x128xf32>
    %c0_12 = arith.constant 0 : index
    %c0_13 = arith.constant 0 : index
    %15 = vector.load %arg6[%c0_12, %c0_13] : memref<1x128xf32, #tpu.memory_space<vmem>>, vector<1x128xf32>
    %16 = vector.broadcast %15 : vector<1x128xf32> to vector<8x128xf32>
    %17 = arith.mulf %14, %16 : vector<8x128xf32>
    %cst_14 = arith.constant dense<0.000000e+00> : vector<8xf32>
    %18 = vector.multi_reduction <add>, %17, %cst_14 [1] : vector<8x128xf32> to vector<8xf32>
    %19 = vector.shape_cast %18 : vector<8xf32> to vector<8x1xf32>
    %c0_15 = arith.constant 0 : index
    %20 = memref.load %arg7[%c0_15] : memref<1xf32, #tpu.memory_space<smem>>
    %21 = vector.broadcast %20 : f32 to vector<8x1xf32>
    %22 = arith.addf %19, %21 : vector<8x1xf32>
    %c0_16 = arith.constant 0 : index
    %c0_17 = arith.constant 0 : index
    %23 = vector.load %arg8[%c0_16, %c0_17] : memref<8x1xf32, #tpu.memory_space<vmem>>, vector<8x1xf32>
    tpu.vector_store %arg8[%c0_16, %c0_17], %22 {strides = array<i32>} : memref<8x1xf32, #tpu.memory_space<vmem>>, vector<8x1xf32>,
    return
  }
  func.func @transform_0(%arg0: i32) -> (i32, i32) {
    %c0_i32 = arith.constant 0 : i32
    %c0_i32_0 = arith.constant 0 : i32
    return %arg0, %c0_i32 : i32, i32
  }
  func.func @transform_1(%arg0: i32) -> (i32, i32) {
    %c0_i32 = arith.constant 0 : i32
    %c0_i32_0 = arith.constant 0 : i32
    %c0_i32_1 = arith.constant 0 : i32
    return %c0_i32, %c0_i32_0 : i32, i32
  }
  func.func @transform_2(%arg0: i32) -> (i32, i32) {
    %c0_i32 = arith.constant 0 : i32
    %c0_i32_0 = arith.constant 0 : i32
    %c0_i32_1 = arith.constant 0 : i32
    return %c0_i32, %c0_i32_0 : i32, i32
  }
  func.func @transform_3(%arg0: i32) -> (i32, i32) {
    %c0_i32 = arith.constant 0 : i32
    %c0_i32_0 = arith.constant 0 : i32
    %c0_i32_1 = arith.constant 0 : i32
    return %c0_i32, %c0_i32_0 : i32, i32
  }
  func.func @transform_4(%arg0: i32) -> (i32, i32) {
    %c0_i32 = arith.constant 0 : i32
    %c0_i32_0 = arith.constant 0 : i32
    %c0_i32_1 = arith.constant 0 : i32
    return %c0_i32, %c0_i32_0 : i32, i32
  }
  func.func @transform_5(%arg0: i32) -> (i32, i32) {
    %c0_i32 = arith.constant 0 : i32
    %c0_i32_0 = arith.constant 0 : i32
    %c0_i32_1 = arith.constant 0 : i32
    return %c0_i32, %c0_i32_0 : i32, i32
  }
  func.func @transform_6(%arg0: i32) -> i32 {
    %c0_i32 = arith.constant 0 : i32
    %c0_i32_0 = arith.constant 0 : i32
    return %c0_i32 : i32
  }
  func.func @transform_7(%arg0: i32) -> (i32, i32) {
    %c0_i32 = arith.constant 0 : i32
    %c0_i32_0 = arith.constant 0 : i32
    return %arg0, %c0_i32 : i32, i32
  }
}

</mosaic_0001>

<bundles_post_ra>
// kernel: tpu_custom_call.1
= control target key start
LH: loop header
LB: loop body
LE: loop exit
PB: predicated region body
PF: predicated region fallthrough
CT: control target
= control target key end

     0   :  { %13 = vsyncpa [#allocation4], 0  ;;  %s542_s0 = inlined_call_operand.hbm [shape: f32[8,16], index: 0, kind: input, shape index: {}]   ;;  %s543_s1 = inlined_call_operand.hbm [shape: f32[16,128], index: 1, kind: input, shape index: {}]   ;;  %s544_s2 = inlined_call_operand.vmem [shape: f32[1,128], index: 2, kind: input, shape index: {}]   ;;  %s545_s3 = inlined_call_operand.hbm [shape: f32[128,128], index: 3, kind: input, shape index: {}]   ;;  %s546_s4 = inlined_call_operand.vmem [shape: f32[1,128], index: 4, kind: input, shape index: {}]   ;;  %s547_s5 = inlined_call_operand.vmem [shape: f32[1,128], index: 5, kind: input, shape index: {}]   ;;  %s548_s6 = inlined_call_operand.<no memory space> [shape: f32[1], index: 6, kind: input, shape index: {}]   ;;  %s549_s7 = inlined_call_operand.vmem [shape: f32[8,1], index: 7, kind: output, shape index: {}]  }
   0x1   :  { %14 = vsyncpa [#allocation6], 0  ;;  %s437_s24 = smov [#allocation5]   ;;  %s367_s28 = scalar_lea.hbm %s543_s1, 256 }
   0x2   :  { %s30_s25 = sshll.u32 %s437_s24, 4  ;;  %p368_p0 = scmp.ne.s32.totalorder %s543_s1, %s367_s28  ;;  %s31_s25 = int_to_ptr.vmem [resolvable:$true] %s30_s25 }
   0x3   :  { %p371_p1 = scmp.lt.u32.totalorder %s367_s28, %s543_s1 }
   0x5   :  { %p373_p2 = pnand %p371_p1, %p368_p0 }
   0x7   :  { %376 = shalt.err (!%p373_p2)
}
   0x8   :  { %s377_s10 = scalar_lea.vmem %s31_s25, 256  ;;  %p382_p4 = scmp.lt.s32.totalorder %s31_s25, %s31_s25 }
   0x9   :  { %p378_p3 = scmp.ne.s32.totalorder %s31_s25, %s377_s10  ;;  %p383_p5 = scmp.lt.s32.totalorder %s377_s10, %s377_s10 }
   0xb   :  { %p384_p6 = por %p383_p5, %p382_p4 }
   0xd   :  { %p385_p7 = pnand %p384_p6, %p378_p3 }
   0xf   :  { %388 = shalt.err (!%p385_p7)
}
  0x10   :  { %s438_s11 = smov 128   ;;  %s439_s12 = smov 8  }
  0x11   :  { %36 = dma.hbm_to_vmem [thread:$0]  %s543_s1, 256, %s31_s25, [#allocation6], %s438_s11, %s438_s11, %s439_s12  }
  0x12   :  { %s440_s15 = smov [#allocation3]   ;;  %s441_s17 = smov [#allocation7]  }
  0x13   :  { %s21_s16 = sshll.u32 %s440_s15, 4  ;;  %s44_s18 = sshll.u32 %s441_s17, 4  ;;  %s22_s16 = int_to_ptr.vmem [resolvable:$true] %s21_s16  ;;  %s45_s18 = int_to_ptr.vmem [resolvable:$true] %s44_s18 }
  0x14   :  { %s389_s21 = scalar_lea.hbm %s542_s0, 128 }
  0x15   :  { %p390_p8 = scmp.ne.s32.totalorder %s542_s0, %s389_s21  ;;  %p393_p9 = scmp.lt.u32.totalorder %s389_s21, %s542_s0 }
  0x17   :  { %p395_p10 = pnand %p393_p9, %p390_p8 }
  0x19   :  { %398 = shalt.err (!%p395_p10)
}
  0x1a   :  { %s399_s1 = scalar_lea.vmem %s22_s16, 128  ;;  %p404_p12 = scmp.lt.s32.totalorder %s22_s16, %s22_s16 }
  0x1b   :  { %p400_p11 = scmp.ne.s32.totalorder %s22_s16, %s399_s1  ;;  %p405_p13 = scmp.lt.s32.totalorder %s399_s1, %s399_s1 }
  0x1d   :  { %p406_p0 = por %p405_p13, %p404_p12 }
  0x1f   :  { %p407_p1 = pnand %p406_p0, %p400_p11 }
  0x21   :  { %410 = shalt.err (!%p407_p1)
}
  0x22   :  { %24 = dma.hbm_to_vmem [thread:$0]  %s542_s0, 128, %s22_s16, [#allocation4]  }
  0x23   :  { %s411_s30 = scalar_lea.hbm %s545_s3, 2048 }
  0x24   :  { %p412_p2 = scmp.ne.s32.totalorder %s545_s3, %s411_s30  ;;  %p415_p3 = scmp.lt.u32.totalorder %s411_s30, %s545_s3 }
  0x26   :  { %p417_p4 = pnand %p415_p3, %p412_p2 }
  0x28   :  { %420 = shalt.err (!%p417_p4)
}
  0x29   :  { %s421_s14 = scalar_lea.vmem %s45_s18, 2048  ;;  %p426_p6 = scmp.lt.s32.totalorder %s45_s18, %s45_s18 }
  0x2a   :  { %p422_p5 = scmp.ne.s32.totalorder %s45_s18, %s421_s14  ;;  %p427_p7 = scmp.lt.s32.totalorder %s421_s14, %s421_s14 }
  0x2c   :  { %p428_p8 = por %p427_p7, %p426_p6 }
  0x2e   :  { %p429_p9 = pnand %p428_p8, %p422_p5 }
  0x30   :  { %432 = shalt.err (!%p429_p9)
}
  0x31   :  { %50 = dma.hbm_to_vmem [thread:$0]  %s545_s3, 2048, %s45_s18, [#allocation6], %s438_s11, %s438_s11, %s439_s12  }
  0x32   :  { %433 = dma.done.wait [#allocation4], 128  }
  0x33   :  { %434 = vsyncadd [#allocation4], 4294967168 }
  0x34   :  { %435 = dma.done.wait [#allocation6], 2304  }
  0x35   :  { %436 = vsyncadd [#allocation6], 4294964992  ;;  %v442_v0 = vmov 0.0|0.0   ;;  %vm443_vm0 = vmmov 0   ;;  %v444_v1 = vmov 0.0   ;;  %v67_v2 = vld [vmem:[#allocation5] sm:$0xff]  ;;  %v256_v42 = vstv %s548_s6 }
  0x36   :  { %332 = vmatprep.subr.bf16.mxu0 %v442_v0  ;;  %294 = vmatprep.mubr.msk.f32.mxu0 %vm443_vm0, %v444_v1  ;;  %v68_v3 = vld [vmem:[#allocation5 + $0x8] sm:$0xff]  ;;  %v151_v5 = vld [vmem:[#allocation7] sm:$0xff]  ;;  %v152_v6 = vld [vmem:[#allocation7 + $0x8] sm:$0xff]  ;;  %vm76_vm1 = vcmask 130048   ;;  %vm258_vm2 = vcmask 7168  }
  0x37   :  { %335 = vmatprep.subr.bf16.mxu1 %v442_v0  ;;  %329 = vmatprep.mubr.msk.f32.mxu1 %vm443_vm0, %v444_v1  ;;  %v333_v4 = vpack.c.bf16 %v68_v3, %v67_v2  ;;  %v153_v7 = vld [vmem:[#allocation7 + $0x10] sm:$0xff]  ;;  %v336_v8 = vpack.c.bf16 %v152_v6, %v151_v5  ;;  %v154_v9 = vld [vmem:[#allocation7 + $0x18] sm:$0xff]  ;;  %v66_v10 = vld [vmem:[#allocation3] sm:$0xff] }
  0x38   :  { %v339_v11 = vpack.c.bf16 %v154_v9, %v153_v7  ;;  %v155_v12 = vld [vmem:[#allocation7 + $0x20] sm:$0xff]  ;;  %v156_v13 = vld [vmem:[#allocation7 + $0x28] sm:$0xff]  ;;  %v157_v15 = vld [vmem:[#allocation7 + $0x30] sm:$0xff] }
  0x39   :  { %334 = vmatpush3.bf16.msra.mxu0 %v333_v4  ;;  %337 = vmatpush3.bf16.msra.mxu1 %v336_v8  ;;  %v342_v14 = vpack.c.bf16 %v156_v13, %v155_v12  ;;  %v158_v16 = vld [vmem:[#allocation7 + $0x38] sm:$0xff]  ;;  %v159_v18 = vld [vmem:[#allocation7 + $0x40] sm:$0xff]  ;;  %v160_v19 = vld [vmem:[#allocation7 + $0x48] sm:$0xff] }
  0x3a   :  { %338 = vmatprep.subr.bf16.mxu1 %v442_v0  ;;  %v345_v17 = vpack.c.bf16 %v158_v16, %v157_v15  ;;  %v348_v20 = vpack.c.bf16 %v160_v19, %v159_v18  ;;  %v161_v21 = vld [vmem:[#allocation7 + $0x50] sm:$0xff]  ;;  %v162_v22 = vld [vmem:[#allocation7 + $0x58] sm:$0xff]  ;;  %v163_v24 = vld [vmem:[#allocation7 + $0x60] sm:$0xff] }
  0x3b   :  { %v351_v23 = vpack.c.bf16 %v162_v22, %v161_v21  ;;  %v164_v25 = vld [vmem:[#allocation7 + $0x68] sm:$0xff]  ;;  %v165_v27 = vld [vmem:[#allocation7 + $0x70] sm:$0xff]  ;;  %v166_v28 = vld [vmem:[#allocation7 + $0x78] sm:$0xff] }
  0x3c   :  { %295 = vmatmul.mubr.msk.f32.vlgmr.msra.gmra.mrb[0].mxu0 %vm76_vm1, %v66_v10  ;;  %v354_v26 = vpack.c.bf16 %v164_v25, %v163_v24  ;;  %v357_v29 = vpack.c.bf16 %v166_v28, %v165_v27  ;;  %v266_v30 = vld [vmem:[%s544_s2] ss:$0 sm:$0xff] }
  0x3d   :  { %340 = vmatpush3.bf16.msra.mxu1 %v339_v11  ;;  %v268_v35 = vld [vmem:[%s546_s4] ss:$0 sm:$0xff] }
  0x3e   :  { %341 = vmatprep.subr.bf16.mxu1 %v442_v0  ;;  %v269_v39 = vld [vmem:[%s547_s5] ss:$0 sm:$0xff] }
  0x41   :  { %343 = vmatpush3.bf16.msra.mxu1 %v342_v14 }
  0x42   :  { %344 = vmatprep.subr.bf16.mxu1 %v442_v0 }
  0x45   :  { %346 = vmatpush3.bf16.msra.mxu1 %v345_v17 }
  0x46   :  { %347 = vmatprep.subr.bf16.mxu1 %v442_v0 }
  0x49   :  { %349 = vmatpush3.bf16.msra.mxu1 %v348_v20 }
  0x4a   :  { %350 = vmatprep.subr.bf16.mxu1 %v442_v0 }
  0x4d   :  { %352 = vmatpush3.bf16.msra.mxu1 %v351_v23 }
  0x4e   :  { %353 = vmatprep.subr.bf16.mxu1 %v442_v0 }
  0x51   :  { %355 = vmatpush3.bf16.msra.mxu1 %v354_v26 }
  0x52   :  { %356 = vmatprep.subr.bf16.mxu1 %v442_v0 }
  0x55   :  { %358 = vmatpush3.bf16.msra.mxu1 %v357_v29 }
 0x10f   :  { %v146_v31 = vpop.f32.mrb[0].mxu0 }
 0x110   :  { %v147_v32 = vadd.f32 %v266_v30, %v146_v31  ;;  %v296_v33 = vpop.f32.mrb[1].mxu0 }
 0x112   :  { %v150_v34 = vmax.f32 %v147_v32, 0.0 }
 0x114   :  { %330 = vmatmul.mubr.f32.vlgmr.msra.gmra.mrb[0].mxu1 %v150_v34 }
 0x1e7   :  { %v240_v36 = vpop.f32.mrb[0].mxu1 }
 0x1e8   :  { %v241_v37 = vadd.f32 %v268_v35, %v240_v36  ;;  %v331_v38 = vpop.f32.mrb[1].mxu1 }
 0x1ea   :  { %v244_v40 = vmax.f32 %v241_v37, 0.0 }
 0x1ec   :  { %v252_v41 = vmul.f32 %v269_v39, %v244_v40 }
 0x1ee   :  { %253 = vadd.xlane.f32.xlu0 %v252_v41 }
 0x27b   :  { %v254_v43 = vpop.xlane.xlu0 %253 }
 0x27c   :  { %v257_v44 = vadd.f32 %v256_v42, %v254_v43 }
 0x27e   :  { %259 = vst.msk [vmem:[%s549_s7] sm:$0xff] %vm258_vm2, %v257_v44 }
 0x27f   :  { %264 = vsyncpa [#allocation4], 1 }
 0x280   :  { %265 = vsyncpa [#allocation6], 1 }

</bundles_post_ra>
